<compile_context>
chip_gen: v6e
topology: v6e:2x2x1
jax: 0.10.0
libtpu: 0.0.40
codegen_flags: <defaults>
</compile_context>

<pallas_src>
import functools

import jax
import jax.numpy as jnp
from jax.experimental import pallas as pl
from jax.experimental.pallas import tpu as pltpu

_LANES = 1024                    # lane-dense last dim (multiple of 128) -> unmasked full vst
_MAX_TILE_ROWS = 2048            # 2048 x 1024 f32 = 8 MiB/buffer; 4 live buffers = 32 MiB
_MAX_TILE_UNITS_1D = 64          # ragged path: up to 64 * 1024 elements per block
_VMEM_LIMIT_BYTES = 48 * 1024 * 1024   # explicit scoped-VMEM budget; safe on v5e/v6e/v7x


def _binarize_kernel(x_ref, o_ref, *, threshold):
    # Compare in f32 (parity with PyTorch, which compares against an f32 scalar tensor),
    # then cast the 1.0/0.0 result to the output dtype. Pure VPU work with huge slack;
    # the kernel is HBM-bandwidth bound.
    pred = x_ref[...].astype(jnp.float32) < threshold
    o_ref[...] = pred.astype(o_ref.dtype)


def _balanced_tile(n_units, max_units, multiple):
    """Tile size (in `units`) giving an even number of roughly equal grid steps
    (>= 2 whenever possible), each <= max_units and a multiple of `multiple`."""
    steps = 2 * pl.cdiv(n_units, 2 * max_units)
    tile = pl.cdiv(n_units, steps)
    tile = ((tile + multiple - 1) // multiple) * multiple
    return min(tile, max_units)


def binarize(x, threshold=0.5, *, out_dtype=None, donate=False):
    """Forward pass of Binarize: 1 where x < threshold else 0.

    out_dtype: optionally emit a narrower mask (e.g. jnp.bfloat16 / jnp.int8) to cut
               output HBM traffic; defaults to x.dtype (original module semantics).
    donate:    if True (and dtypes match), alias the input buffer into the output.
               Only enable when the caller no longer needs `x` (otherwise XLA inserts
               a defensive copy, which costs a full extra HBM pass).
    """
    orig_shape = x.shape
    out_dtype = x.dtype if out_dtype is None else jnp.dtype(out_dtype)
    total = x.size
    if total == 0:
        return jnp.zeros(orig_shape, dtype=out_dtype)

    flat = x.reshape(-1)  # free (bitcast) for a contiguous array
    kernel = functools.partial(_binarize_kernel, threshold=float(threshold))
    alias = bool(donate) and (out_dtype == x.dtype)
    maybe_alias = {"input_output_aliases": {0: 0}} if alias else {}
    cparams = pltpu.CompilerParams(
        dimension_semantics=("parallel",),        # shards across TCs on v7x; neutral elsewhere
        vmem_limit_bytes=_VMEM_LIMIT_BYTES,
    )

    if total % _LANES == 0:
        # Fast path: lane-dense (rows, 1024) slab, no padding needed.
        rows = total // _LANES
        x2d = flat.reshape(rows, _LANES)
        tile_rows = rows if rows <= 8 else _balanced_tile(rows, _MAX_TILE_ROWS, 8)
        out = pl.pallas_call(
            kernel,
            out_shape=jax.ShapeDtypeStruct((rows, _LANES), out_dtype),
            grid=(pl.cdiv(rows, tile_rows),),
            in_specs=[pl.BlockSpec((tile_rows, _LANES), lambda i: (i, 0))],
            out_specs=pl.BlockSpec((tile_rows, _LANES), lambda i: (i, 0)),
            compiler_params=cparams,
            **maybe_alias,
        )(x2d)
    else:
        # Ragged path: tile the unpadded flat array directly; Pallas masks the last block.
        # No jnp.pad / output slice -> no extra HBM read+write passes.
        units = pl.cdiv(total, _LANES)
        if units <= 1:
            tile = total  # single block equal to the full (small) array
        else:
            tile = _balanced_tile(units, _MAX_TILE_UNITS_1D, 1) * _LANES
        out = pl.pallas_call(
            kernel,
            out_shape=jax.ShapeDtypeStruct((total,), out_dtype),
            grid=(pl.cdiv(total, tile),),
            in_specs=[pl.BlockSpec((tile,), lambda i: (i,))],
            out_specs=pl.BlockSpec((tile,), lambda i: (i,)),
            compiler_params=cparams,
            **maybe_alias,
        )(flat)

    return out.reshape(orig_shape)


# TODO(synk): the autograd backward (straight-through estimator + grad_threshold) is not
# implemented; this module only provides the forward pass, matching the requested scope.


if __name__ == "__main__":
    # Main example: small NCHW activation, consistent with the module's elementwise forward.
    key = jax.random.PRNGKey(0)
    x = jax.random.normal(key, (2, 4, 16, 16), dtype=jnp.float32)

    out = binarize(x, threshold=0.5)
    jax.block_until_ready(out)
    ref = jnp.where(x < 0.5, jnp.ones_like(x), jnp.zeros_like(x))
    assert out.shape == x.shape and out.dtype == x.dtype
    assert bool(jnp.all(out == ref))

    # Aligned multi-tile path (rows=64 -> 2 balanced grid steps, pipelined / TC-shardable).
    x_big = jax.random.normal(jax.random.PRNGKey(1), (4, 8, 32, 64), dtype=jnp.float32)
    out_big = binarize(x_big, threshold=0.1)
    jax.block_until_ready(out_big)
    ref_big = jnp.where(x_big < 0.1, jnp.ones_like(x_big), jnp.zeros_like(x_big))
    assert out_big.shape == x_big.shape and out_big.dtype == x_big.dtype
    assert bool(jnp.all(out_big == ref_big))

    # Ragged (not a multiple of 1024) path: no pad / no slice, masked edge block.
    x_rag = jax.random.normal(jax.random.PRNGKey(2), (3, 5, 37, 41), dtype=jnp.float32)
    out_rag = binarize(x_rag, threshold=0.1)
    jax.block_until_ready(out_rag)
    ref_rag = jnp.where(x_rag < 0.1, jnp.ones_like(x_rag), jnp.zeros_like(x_rag))
    assert out_rag.shape == x_rag.shape and out_rag.dtype == x_rag.dtype
    assert bool(jnp.all(out_rag == ref_rag))

    print("KERNEL_OK")
</pallas_src>

<mosaic_0001>
module attributes {stable_mosaic.version = 11 : i64} {
  func.func @_binarize_kernel(%arg0: i32, %arg1: memref<2x1024xf32, #tpu.memory_space<vmem>>, %arg2: memref<2x1024xf32, #tpu.memory_space<vmem>>) attributes {dimension_semantics = [#tpu.dimension_semantics<parallel>], iteration_bounds = array<i64: 1>, scalar_prefetch = 0 : i64, scratch_operands = 0 : i64, tpu.core_type = #tpu.core_type<tc>, window_params = [{transform_indices = @transform_0, window_bounds = array<i64: 2, 1024>}, {transform_indices = @transform_1, window_bounds = array<i64: 2, 1024>}]} {
    %c0 = arith.constant 0 : index
    %c0_0 = arith.constant 0 : index
    %0 = vector.load %arg1[%c0, %c0_0] : memref<2x1024xf32, #tpu.memory_space<vmem>>, vector<2x1024xf32>
    %cst = arith.constant 5.000000e-01 : f32
    %1 = vector.broadcast %cst : f32 to vector<2x1024xf32>
    %2 = arith.cmpf olt, %0, %1 : vector<2x1024xf32>
    %3 = arith.extui %2 : vector<2x1024xi1> to vector<2x1024xi32>
    %4 = arith.sitofp %3 : vector<2x1024xi32> to vector<2x1024xf32>
    %c0_1 = arith.constant 0 : index
    %c0_2 = arith.constant 0 : index
    %5 = vector.load %arg2[%c0_1, %c0_2] : memref<2x1024xf32, #tpu.memory_space<vmem>>, vector<2x1024xf32>
    tpu.vector_store %arg2[%c0_1, %c0_2], %4 {strides = array<i32>} : memref<2x1024xf32, #tpu.memory_space<vmem>>, vector<2x1024xf32>,
    return
  }
  func.func @transform_0(%arg0: i32) -> (i32, i32) {
    %c0_i32 = arith.constant 0 : i32
    %c0_i32_0 = arith.constant 0 : i32
    return %arg0, %c0_i32 : i32, i32
  }
  func.func @transform_1(%arg0: i32) -> (i32, i32) {
    %c0_i32 = arith.constant 0 : i32
    %c0_i32_0 = arith.constant 0 : i32
    return %arg0, %c0_i32 : i32, i32
  }
}

</mosaic_0001>

<bundles_post_ra>
// kernel: tpu_custom_call.1
= control target key start
LH: loop header
LB: loop body
LE: loop exit
PB: predicated region body
PF: predicated region fallthrough
CT: control target
= control target key end

     0   :  { %6 = vsyncpa [#allocation3], 0  ;;  %s114_s0 = inlined_call_operand.hbm [shape: f32[2,1024], index: 0, kind: input, shape index: {}]   ;;  %s115_s1 = inlined_call_operand.hbm [shape: f32[2,1024], index: 1, kind: output, shape index: {}]  }
   0x1   :  { %7 = vsyncpa [#allocation4], 0  ;;  %s95_s6 = smov [#allocation2]  }
   0x2   :  { %s14_s7 = sshll.u32 %s95_s6, 4  ;;  %s15_s7 = int_to_ptr.vmem [resolvable:$true] %s14_s7 }
   0x3   :  { %s59_s8 = scalar_lea.vmem %s15_s7, 256  ;;  %p64_p1 = scmp.lt.s32.totalorder %s15_s7, %s15_s7 }
   0x4   :  { %p60_p0 = scmp.ne.s32.totalorder %s15_s7, %s59_s8  ;;  %p65_p2 = scmp.lt.s32.totalorder %s59_s8, %s59_s8 }
   0x6   :  { %p66_p3 = por %p65_p2, %p64_p1 }
   0x8   :  { %p67_p4 = pnand %p66_p3, %p60_p0 }
   0xa   :  { %70 = shalt.err (!%p67_p4)
}
   0xb   :  { %17 = dma.hbm_to_vmem [thread:$0]  %s114_s0, 256, %s15_s7, [#allocation3]  }
   0xc   :  { %91 = dma.done.wait [#allocation3], 256  }
   0xd   :  { %92 = vsyncadd [#allocation3], 4294967040  ;;  %s96_s11 = smov [#allocation5]   ;;  %v21_v0 = vld [vmem:[#allocation2] sm:$0xff]  ;;  %v22_v1 = vld [vmem:[#allocation2 + $0x8] sm:$0xff]  ;;  %v97_v2 = vmov 0.0  }
   0xe   :  { %s37_s12 = sshll.u32 %s96_s11, 4  ;;  %vm23_vm0 = vcmp.lt.f32.partialorder %v21_v0, 0.5  ;;  %vm24_vm1 = vcmp.lt.f32.partialorder %v22_v1, 0.5  ;;  %s38_s12 = int_to_ptr.vmem [resolvable:$true] %s37_s12 }
   0xf   :  { %v46_v3 = vsel %vm23_vm0, 1.0, %v97_v2  ;;  %v47_v4 = vsel %vm24_vm1, 1.0, %v97_v2  ;;  %s71_s13 = scalar_lea.vmem %s38_s12, 256  ;;  %p76_p6 = scmp.lt.s32.totalorder %s38_s12, %s38_s12 }
  0x10   :  { %29 = vst [vmem:[#allocation5] sm:$0xff] %v46_v3  ;;  %30 = vst [vmem:[#allocation5 + $0x8] sm:$0xff] %v47_v4  ;;  %p72_p5 = scmp.ne.s32.totalorder %s38_s12, %s71_s13  ;;  %p77_p7 = scmp.lt.s32.totalorder %s71_s13, %s71_s13 }
  0x12   :  { %p78_p8 = por %p77_p7, %p76_p6 }
  0x14   :  { %p79_p9 = pnand %p78_p8, %p72_p5 }
  0x16   :  { %82 = shalt.err (!%p79_p9)
}
  0x17   :  { %40 = dma.vmem_to_hbm [thread:$0]  %s38_s12, 256, %s115_s1, [#allocation4]  }
  0x18   :  { %93 = dma.done.wait [#allocation4], 256  }
  0x19   :  { %94 = vsyncadd [#allocation4], 4294967040 }
  0x1a   :  { %44 = vsyncpa [#allocation3], 1 }
  0x1b   :  { %45 = vsyncpa [#allocation4], 1 }

</bundles_post_ra>
